<compile_context>
chip_gen: v7x
topology: tpu7x:2x2x1
jax: 0.10.0
libtpu: 0.0.40
codegen_flags: <defaults>
</compile_context>

<pallas_src>
import jax
import jax.numpy as jnp
from jax.experimental import pallas as pl
from jax.experimental.pallas import tpu as pltpu


def _round_up(x: int, m: int) -> int:
    return ((x + m - 1) // m) * m


def _residual_kernel(x_ref, w_ref, b_ref, o_ref):
    # x_ref: (tm, Hp) f32   w_ref: (Hp, Hp) bf16   b_ref: (1, Hp) f32
    x = x_ref[...]
    # MXU bf16 x bf16 -> f32 accumulation.
    h = jnp.dot(x.astype(jnp.bfloat16), w_ref[...],
                preferred_element_type=jnp.float32)
    h = h + b_ref[...]
    h = jax.nn.gelu(h)
    # Residual against the original (un-rounded) f32 x.
    o_ref[...] = (h + x.astype(jnp.float32)).astype(o_ref.dtype)


def residual_forward(x, w, b, *, tm=512):
    """Fused Residual(Linear(H, H) + GELU).

    x: (B, T, H) float32, w: (H, H), b: (H,).  Returns fn(x) + x.
    """
    B, T, H = x.shape
    M = B * T

    # Pad hidden dim to a multiple of 128 (lane-dense loads/stores) and rows
    # to a multiple of the row tile (no M % tm restriction, masked-free tail).
    Hp = _round_up(H, 128)
    tm_eff = min(_round_up(tm, 128), _round_up(M, 128))
    Mp = _round_up(M, tm_eff)

    x2 = x.reshape(M, H).astype(jnp.float32)
    w2 = w.astype(jnp.float32)
    b2 = b.astype(jnp.float32)
    if Hp != H:
        x2 = jnp.pad(x2, ((0, 0), (0, Hp - H)))
        w2 = jnp.pad(w2, ((0, Hp - H), (0, Hp - H)))
        b2 = jnp.pad(b2, ((0, Hp - H),))
    if Mp != M:
        x2 = jnp.pad(x2, ((0, Mp - M), (0, 0)))

    # Weight in bf16 (halves HBM traffic / VMEM footprint); bias stays f32.
    w_bf = w2.astype(jnp.bfloat16)
    b_row = b2.reshape(1, Hp)

    grid = (Mp // tm_eff,)

    # VMEM budget: double-buffered x/out tiles (f32) + resident bf16 weight
    # + bias + epilogue temporaries; headroom, capped at v7x physical 64 MiB.
    vmem_need = (2 * 2 * tm_eff * Hp * 4          # x + out, 2 buffers each
                 + Hp * Hp * 2 + Hp * 4           # weight (bf16) + bias
                 + 4 * tm_eff * Hp * 4)           # in-kernel temporaries
    vmem_limit = min(max(32 * 1024 * 1024, 2 * vmem_need), 64 * 1024 * 1024)

    cost = pl.CostEstimate(
        flops=2 * Mp * Hp * Hp,
        transcendentals=Mp * Hp,                  # tanh in GELU
        bytes_accessed=2 * Mp * Hp * 4 + Hp * Hp * 2 + Hp * 4,
    )

    out = pl.pallas_call(
        _residual_kernel,
        out_shape=jax.ShapeDtypeStruct((Mp, Hp), x.dtype),
        grid_spec=pltpu.PrefetchScalarGridSpec(
            num_scalar_prefetch=0,
            grid=grid,
            in_specs=[
                # streamed, double-buffered row tile of x
                pl.BlockSpec((tm_eff, Hp), lambda i: (i, 0)),
                # invariant operands: whole-array resident in VMEM,
                # not run through the double-buffered pipeline
                pl.BlockSpec(memory_space=pltpu.MemorySpace.VMEM),
                pl.BlockSpec(memory_space=pltpu.MemorySpace.VMEM),
            ],
            out_specs=pl.BlockSpec((tm_eff, Hp), lambda i: (i, 0)),
        ),
        compiler_params=pltpu.CompilerParams(
            dimension_semantics=("parallel",),
            vmem_limit_bytes=vmem_limit,
        ),
        cost_estimate=cost,
    )(x2, w_bf, b_row)

    return out[:M, :H].reshape(B, T, H)


def _reference_exact(x, w, b):
    # Same math as the kernel: bf16 matmul operands, f32 accumulation/epilogue.
    h = jnp.einsum(
        "bth,hk->btk",
        x.astype(jnp.bfloat16), w.astype(jnp.bfloat16),
        preferred_element_type=jnp.float32,
    ) + b
    return jax.nn.gelu(h) + x


def _reference_f32(x, w, b):
    h = jnp.einsum("bth,hk->btk", x, w) + b
    return jax.nn.gelu(h) + x


if __name__ == "__main__":
    # TODO(synk): Residual wraps an arbitrary fn; a generic callable has no
    # single Pallas equivalent, so fn is instantiated here as Linear(H,H)+GELU.
    key = jax.random.PRNGKey(0)
    kx, kw, kb = jax.random.split(key, 3)

    B, T, H = 2, 8, 128
    x = jax.random.normal(kx, (B, T, H), dtype=jnp.float32)
    w = jax.random.normal(kw, (H, H), dtype=jnp.float32) * (1.0 / jnp.sqrt(H))
    b = jax.random.normal(kb, (H,), dtype=jnp.float32) * 0.01

    out = residual_forward(x, w, b)
    out = jax.block_until_ready(out)
    assert out.shape == (B, T, H)
    assert out.dtype == x.dtype

    ref = _reference_exact(x, w, b)
    assert jnp.allclose(out, ref, atol=2e-3, rtol=2e-3), "mismatch vs bf16 reference"

    ref32 = _reference_f32(x, w, b)
    assert jnp.allclose(out, ref32, atol=5e-2, rtol=5e-2), "mismatch vs f32 reference"

    print("KERNEL_OK")
</pallas_src>

<mosaic_0001>
module attributes {stable_mosaic.version = 11 : i64} {
  func.func @_residual_kernel(%arg0: i32, %arg1: memref<128x128xf32, #tpu.memory_space<vmem>>, %arg2: memref<128x128xbf16, #tpu.memory_space<vmem>>, %arg3: memref<1x128xf32, #tpu.memory_space<vmem>>, %arg4: memref<128x128xf32, #tpu.memory_space<vmem>>) attributes {dimension_semantics = [#tpu.dimension_semantics<parallel>], iteration_bounds = array<i64: 1>, scalar_prefetch = 0 : i64, scratch_operands = 0 : i64, tpu.core_type = #tpu.core_type<tc>, window_params = [{transform_indices = @transform_0, window_bounds = array<i64: 128, 128>}, {pipeline_mode = #tpu.pipeline_mode<synchronous>, transform_indices = @transform_1, window_bounds = array<i64: 128, 128>}, {pipeline_mode = #tpu.pipeline_mode<synchronous>, transform_indices = @transform_2, window_bounds = array<i64: 1, 128>}, {transform_indices = @transform_3, window_bounds = array<i64: 128, 128>}]} {
    %c0 = arith.constant 0 : index
    %c0_0 = arith.constant 0 : index
    %0 = vector.load %arg1[%c0, %c0_0] : memref<128x128xf32, #tpu.memory_space<vmem>>, vector<128x128xf32>
    %1 = arith.truncf %0 : vector<128x128xf32> to vector<128x128xbf16>
    %c0_1 = arith.constant 0 : index
    %c0_2 = arith.constant 0 : index
    %2 = vector.load %arg2[%c0_1, %c0_2] : memref<128x128xbf16, #tpu.memory_space<vmem>>, vector<128x128xbf16>
    %cst = arith.constant dense<0.000000e+00> : vector<128x128xf32>
    %3 = tpu.matmul %1, %2, %cst {dimension_numbers = #tpu.dot_dimension_numbers<[1], [0], [0], [1], [0, 0, 1, 1], [], []>} : vector<128x128xbf16>, vector<128x128xbf16>, vector<128x128xf32> -> vector<128x128xf32>
    %c0_3 = arith.constant 0 : index
    %c0_4 = arith.constant 0 : index
    %4 = vector.load %arg3[%c0_3, %c0_4] : memref<1x128xf32, #tpu.memory_space<vmem>>, vector<1x128xf32>
    %5 = vector.broadcast %4 : vector<1x128xf32> to vector<128x128xf32>
    %6 = arith.addf %3, %5 : vector<128x128xf32>
    %7 = arith.mulf %6, %6 : vector<128x128xf32>
    %8 = arith.mulf %6, %7 : vector<128x128xf32>
    %cst_5 = arith.constant 4.471500e-02 : f32
    %9 = vector.broadcast %cst_5 : f32 to vector<128x128xf32>
    %10 = arith.mulf %9, %8 : vector<128x128xf32>
    %11 = arith.addf %6, %10 : vector<128x128xf32>
    %cst_6 = arith.constant 0.797884583 : f32
    %12 = vector.broadcast %cst_6 : f32 to vector<128x128xf32>
    %13 = arith.mulf %12, %11 : vector<128x128xf32>
    %14 = math.tanh %13 : vector<128x128xf32>
    %cst_7 = arith.constant 1.000000e+00 : f32
    %15 = vector.broadcast %cst_7 : f32 to vector<128x128xf32>
    %16 = arith.addf %15, %14 : vector<128x128xf32>
    %cst_8 = arith.constant 5.000000e-01 : f32
    %17 = vector.broadcast %cst_8 : f32 to vector<128x128xf32>
    %18 = arith.mulf %17, %16 : vector<128x128xf32>
    %19 = arith.mulf %6, %18 : vector<128x128xf32>
    %20 = arith.addf %19, %0 : vector<128x128xf32>
    %c0_9 = arith.constant 0 : index
    %c0_10 = arith.constant 0 : index
    %21 = vector.load %arg4[%c0_9, %c0_10] : memref<128x128xf32, #tpu.memory_space<vmem>>, vector<128x128xf32>
    tpu.vector_store %arg4[%c0_9, %c0_10], %20 {strides = array<i32>} : memref<128x128xf32, #tpu.memory_space<vmem>>, vector<128x128xf32>,
    return
  }
  func.func @transform_0(%arg0: i32) -> (i32, i32) {
    %c0_i32 = arith.constant 0 : i32
    %c0_i32_0 = arith.constant 0 : i32
    return %arg0, %c0_i32 : i32, i32
  }
  func.func @transform_1(%arg0: i32) -> (i32, i32) {
    %c0_i32 = arith.constant 0 : i32
    %c0_i32_0 = arith.constant 0 : i32
    %c0_i32_1 = arith.constant 0 : i32
    return %c0_i32, %c0_i32_0 : i32, i32
  }
  func.func @transform_2(%arg0: i32) -> (i32, i32) {
    %c0_i32 = arith.constant 0 : i32
    %c0_i32_0 = arith.constant 0 : i32
    %c0_i32_1 = arith.constant 0 : i32
    return %c0_i32, %c0_i32_0 : i32, i32
  }
  func.func @transform_3(%arg0: i32) -> (i32, i32) {
    %c0_i32 = arith.constant 0 : i32
    %c0_i32_0 = arith.constant 0 : i32
    return %arg0, %c0_i32 : i32, i32
  }
}

</mosaic_0001>

<bundles_post_ra>
// kernel: tpu_custom_call.1
= control target key start
LH: loop header
LB: loop body
LE: loop exit
PB: predicated region body
PF: predicated region fallthrough
CT: control target
= control target key end

     0   :  { %8 = vsyncpa [#allocation3], 0  ;;  %s888_s0 = inlined_call_operand.hbm [shape: f32[128,128], index: 0, kind: input, shape index: {}]   ;;  %s889_s1 = inlined_call_operand.hbm [shape: bf16[128,128], index: 1, kind: input, shape index: {}]   ;;  %s890_s2 = inlined_call_operand.vmem [shape: f32[1,128], index: 2, kind: input, shape index: {}]   ;;  %s891_s3 = inlined_call_operand.hbm [shape: f32[128,128], index: 3, kind: output, shape index: {}]  }
   0x1   :  { %9 = vsyncpa [#allocation6], 0 }
   0x2   :  { %10 = vsyncpa [#allocation4], 0  ;;  %s622_s12 = smov [#allocation2]   ;;  %s550_s16 = scalar_lea.hbm %s888_s0, 2048 }
   0x3   :  { %s16_s13 = sshll.u32 %s622_s12, 4  ;;  %p551_p0 = scmp.ne.s32.totalorder %s888_s0, %s550_s16  ;;  %s17_s13 = int_to_ptr.vmem [resolvable:$true] %s16_s13 }
   0x4   :  { %p554_p1 = scmp.lt.u32.totalorder %s550_s16, %s888_s0 }
   0x6   :  { %p556_p2 = pnand %p554_p1, %p551_p0 }
   0x8   :  { %559 = shalt.err (!%p556_p2)
}
   0x9   :  { %s560_s21 = scalar_lea.vmem %s17_s13, 2048  ;;  %p565_p4 = scmp.lt.s32.totalorder %s17_s13, %s17_s13 }
   0xa   :  { %p561_p3 = scmp.ne.s32.totalorder %s17_s13, %s560_s21  ;;  %p566_p5 = scmp.lt.s32.totalorder %s560_s21, %s560_s21 }
   0xc   :  { %p567_p6 = por %p566_p5, %p565_p4 }
   0xe   :  { %p568_p7 = pnand %p567_p6, %p561_p3 }
  0x10   :  { %571 = shalt.err (!%p568_p7)
}
  0x11   :  { %s623_s22 = smov 128   ;;  %s624_s23 = smov 8  }
  0x12   :  { %22 = dma.hbm_to_vmem [thread:$0]  %s888_s0, 2048, %s17_s13, [#allocation3], %s623_s22, %s623_s22, %s624_s23  }
  0x13   :  { %s625_s26 = smov [#allocation5]   ;;  %s572_s30 = scalar_lea.hbm %s889_s1, 1024 }
  0x14   :  { %s28_s27 = sshll.u32 %s625_s26, 4  ;;  %p573_p8 = scmp.ne.s32.totalorder %s889_s1, %s572_s30  ;;  %s29_s27 = int_to_ptr.vmem [resolvable:$true] %s28_s27 }
  0x15   :  { %p576_p9 = scmp.lt.u32.totalorder %s572_s30, %s889_s1 }
  0x17   :  { %p578_p10 = pnand %p576_p9, %p573_p8 }
  0x19   :  { %581 = shalt.err (!%p578_p10)
}
  0x1a   :  { %s582_s8 = scalar_lea.vmem %s29_s27, 1024  ;;  %p587_p12 = scmp.lt.s32.totalorder %s29_s27, %s29_s27 }
  0x1b   :  { %p583_p11 = scmp.ne.s32.totalorder %s29_s27, %s582_s8  ;;  %p588_p13 = scmp.lt.s32.totalorder %s582_s8, %s582_s8 }
  0x1d   :  { %p589_p0 = por %p588_p13, %p587_p12 }
  0x1f   :  { %p590_p1 = pnand %p589_p0, %p583_p11 }
  0x21   :  { %593 = shalt.err (!%p590_p1)
}
  0x22   :  { %s626_s0 = smov 64   ;;  %s627_s9 = smov 4  }
  0x23   :  { %34 = dma.hbm_to_vmem [thread:$0]  %s889_s1, 1024, %s29_s27, [#allocation6], %s626_s0, %s626_s0, %s627_s9  }
  0x24   :  { %616 = dma.done.wait [#allocation3], 2048  }
  0x25   :  { %617 = vsyncadd [#allocation3], 4294965248 }
  0x26   :  { %618 = dma.done.wait [#allocation6], 1024  }
  0x27   :  { %619 = vsyncadd [#allocation6], 4294966272  ;;  %v510_v0 = vld [vmem:[#allocation5] sm:$0xff]   ;;  %v511_v1 = vld [vmem:[#allocation5 + $0x8] sm:$0xff]  }
  0x28   :  { %455 = vmatprep.subr.bf16.mxu0 %v510_v0  ;;  %487 = vmatprep.subr.bf16.mxu1 %v510_v0  ;;  %v512_v2 = vld [vmem:[#allocation5 + $0x10] sm:$0xff]   ;;  %v513_v3 = vld [vmem:[#allocation5 + $0x18] sm:$0xff]   ;;  %v676_v4 = vld [vmem:[#allocation2] sm:$0xff] }
  0x29   :  { %456 = vmatpush3.bf16.msra.mxu0 %v510_v0  ;;  %495 = vmatpush3.bf16.msra.mxu1 %v510_v0  ;;  %v678_v5 = vld [vmem:[#allocation2 + $0x8] sm:$0xff]  ;;  %v680_v6 = vld [vmem:[#allocation2 + $0x40] sm:$0xff]  ;;  %v516_v12 = vld [vmem:[#allocation5 + $0x30] sm:$0xff]  }
  0x2a   :  { %457 = vmatprep.subr.bf16.mxu0 %v511_v1  ;;  %488 = vmatprep.subr.bf16.mxu1 %v511_v1  ;;  %v60_v7 = vpack.c.bf16 %v678_v5, %v676_v4  ;;  %v684_v8 = vld [vmem:[#allocation2 + $0x48] sm:$0xff]  ;;  %v514_v10 = vld [vmem:[#allocation5 + $0x20] sm:$0xff]   ;;  %v517_v13 = vld [vmem:[#allocation5 + $0x38] sm:$0xff]  }
  0x2b   :  { %v64_v9 = vpack.c.bf16 %v684_v8, %v680_v6  ;;  %v515_v11 = vld [vmem:[#allocation5 + $0x28] sm:$0xff]   ;;  %v688_v14 = vld [vmem:[#allocation2 + $0x10] sm:$0xff]  ;;  %v690_v15 = vld [vmem:[#allocation2 + $0x18] sm:$0xff] }
  0x2c   :  { %471 = vmatprep.mubr.bf16.mxu0 %v60_v7  ;;  %v692_v16 = vld [vmem:[#allocation2 + $0x50] sm:$0xff]  ;;  %v694_v17 = vld [vmem:[#allocation2 + $0x58] sm:$0xff]  ;;  %v696_v18 = vld [vmem:[#allocation2 + $0x20] sm:$0xff]  ;;  %v61_v22 = vpack.c.bf16 %v690_v15, %v688_v14 }
  0x2d   :  { %458 = vmatpush3.bf16.msra.mxu0 %v511_v1  ;;  %496 = vmatpush3.bf16.msra.mxu1 %v511_v1  ;;  %v698_v19 = vld [vmem:[#allocation2 + $0x28] sm:$0xff]  ;;  %v700_v20 = vld [vmem:[#allocation2 + $0x60] sm:$0xff]  ;;  %v65_v23 = vpack.c.bf16 %v694_v17, %v692_v16  ;;  %v712_v26 = vld [vmem:[#allocation2 + $0x30] sm:$0xff] }
  0x2e   :  { %459 = vmatprep.subr.bf16.mxu0 %v512_v2  ;;  %489 = vmatprep.subr.bf16.mxu1 %v512_v2  ;;  %v702_v21 = vld [vmem:[#allocation2 + $0x68] sm:$0xff]  ;;  %v62_v24 = vpack.c.bf16 %v698_v19, %v696_v18  ;;  %v714_v27 = vld [vmem:[#allocation2 + $0x38] sm:$0xff]  ;;  %v716_v28 = vld [vmem:[#allocation2 + $0x70] sm:$0xff] }
  0x2f   :  { %479 = vmatprep.mubr.bf16.mxu1 %v64_v9  ;;  %v66_v25 = vpack.c.bf16 %v702_v21, %v700_v20  ;;  %v718_v29 = vld [vmem:[#allocation2 + $0x78] sm:$0xff]  ;;  %v63_v30 = vpack.c.bf16 %v714_v27, %v712_v26  ;;  %v727_v32 = vld [vmem:[%s890_s2] ss:$0 sm:$0xff]  ;;  %s628_s2 = smov [#allocation7]  }
  0x30   :  { %v67_v31 = vpack.c.bf16 %v718_v29, %v716_v28  ;;  %s417_s13 = sshll.u32 %s628_s2, 4  ;;  %s418_s13 = int_to_ptr.vmem [resolvable:$true] %s417_s13 }
  0x31   :  { %460 = vmatpush3.bf16.msra.mxu0 %v512_v2  ;;  %497 = vmatpush3.bf16.msra.mxu1 %v512_v2  ;;  %s594_s14 = scalar_lea.vmem %s418_s13, 2048  ;;  %p599_p3 = scmp.lt.s32.totalorder %s418_s13, %s418_s13 }
  0x32   :  { %461 = vmatprep.subr.bf16.mxu0 %v513_v3  ;;  %490 = vmatprep.subr.bf16.mxu1 %v513_v3  ;;  %p595_p2 = scmp.ne.s32.totalorder %s418_s13, %s594_s14  ;;  %p600_p4 = scmp.lt.s32.totalorder %s594_s14, %s594_s14 }
  0x34   :  { %p601_p5 = por %p600_p4, %p599_p3 }
  0x35   :  { %462 = vmatpush3.bf16.msra.mxu0 %v513_v3  ;;  %498 = vmatpush3.bf16.msra.mxu1 %v513_v3 }
  0x36   :  { %463 = vmatprep.subr.bf16.mxu0 %v514_v10  ;;  %491 = vmatprep.subr.bf16.mxu1 %v514_v10  ;;  %p602_p6 = pnand %p601_p5, %p595_p2 }
  0x39   :  { %464 = vmatpush3.bf16.msra.mxu0 %v514_v10  ;;  %499 = vmatpush3.bf16.msra.mxu1 %v514_v10 }
  0x3a   :  { %465 = vmatprep.subr.bf16.mxu0 %v515_v11  ;;  %492 = vmatprep.subr.bf16.mxu1 %v515_v11 }
  0x3d   :  { %466 = vmatpush3.bf16.msra.mxu0 %v515_v11  ;;  %500 = vmatpush3.bf16.msra.mxu1 %v515_v11 }
  0x3e   :  { %467 = vmatprep.subr.bf16.mxu0 %v516_v12  ;;  %493 = vmatprep.subr.bf16.mxu1 %v516_v12 }
  0x41   :  { %468 = vmatpush3.bf16.msra.mxu0 %v516_v12  ;;  %501 = vmatpush3.bf16.msra.mxu1 %v516_v12 }
  0x42   :  { %469 = vmatprep.subr.bf16.mxu0 %v517_v13  ;;  %494 = vmatprep.subr.bf16.mxu1 %v517_v13 }
  0x45   :  { %470 = vmatpush3.bf16.msra.mxu0 %v517_v13  ;;  %502 = vmatpush3.bf16.msra.mxu1 %v517_v13 }
  0x48   :  { %472 = vmatmul.mubr.bf16.vlgmr.msra.gmra.mrb[0].mxu0 %v61_v22  ;;  %480 = vmatmul.mubr.bf16.vlgmr.msra.gmra.mrb[0].mxu1 %v65_v23 }
  0x49   :  { %475 = vmatprep.mubr.bf16.mxu0 %v62_v24  ;;  %483 = vmatprep.mubr.bf16.mxu1 %v66_v25 }
  0x50   :  { %476 = vmatmul.mubr.bf16.gmra.mrb[4].mxu0 %v63_v30  ;;  %484 = vmatmul.mubr.bf16.gmra.mrb[4].mxu1 %v67_v31 }
 0x11b   :  { %v473_v33 = vpop.f32.mrb[0].mxu0  ;;  %v481_v34 = vpop.f32.mrb[0].mxu1 }
 0x11c   :  { %v730_v35 = vadd.f32 %v473_v33, %v727_v32  ;;  %v733_v36 = vadd.f32 %v481_v34, %v727_v32  ;;  %v173_v37 = vpop.f32.mrb[1].mxu0  ;;  %v205_v38 = vpop.f32.mrb[1].mxu1 }
 0x11d   :  { %v736_v39 = vadd.f32 %v727_v32, %v173_v37  ;;  %v739_v40 = vadd.f32 %v727_v32, %v205_v38  ;;  %v474_v41 = vpop.f32.mrb[2].mxu0  ;;  %v482_v42 = vpop.f32.mrb[2].mxu1 }
 0x11e   :  { %v238_v43 = vmul.f32 %v730_v35, %v730_v35  ;;  %v246_v44 = vmul.f32 %v733_v36, %v733_v36  ;;  %v746_v45 = vadd.f32 %v474_v41, %v727_v32  ;;  %v749_v46 = vadd.f32 %v482_v42, %v727_v32  ;;  %v176_v47 = vpop.f32.mrb[3].mxu0  ;;  %v208_v48 = vpop.f32.mrb[3].mxu1 }
 0x11f   :  { %v236_v49 = vmul.f32 %v736_v39, %v736_v39  ;;  %v244_v50 = vmul.f32 %v739_v40, %v739_v40  ;;  %v756_v51 = vadd.f32 %v727_v32, %v176_v47  ;;  %v759_v52 = vadd.f32 %v727_v32, %v208_v48 }
 0x120   :  { %v254_v53 = vmul.f32 %v238_v43, %v730_v35  ;;  %v262_v54 = vmul.f32 %v246_v44, %v733_v36  ;;  %v239_v55 = vmul.f32 %v746_v45, %v746_v45  ;;  %v247_v56 = vmul.f32 %v749_v46, %v749_v46 }
 0x121   :  { %v252_v57 = vmul.f32 %v236_v49, %v736_v39  ;;  %v260_v58 = vmul.f32 %v244_v50, %v739_v40  ;;  %v237_v59 = vmul.f32 %v756_v51, %v756_v51  ;;  %v245_v60 = vmul.f32 %v759_v52, %v759_v52 }
 0x122   :  { %v270_v61 = vmul.f32 0.044715, %v254_v53  ;;  %v278_v62 = vmul.f32 0.044715, %v262_v54  ;;  %v255_v63 = vmul.f32 %v239_v55, %v746_v45  ;;  %v263_v0 = vmul.f32 %v247_v56, %v749_v46 }
 0x123   :  { %v268_v1 = vmul.f32 0.044715, %v252_v57  ;;  %v276_v2 = vmul.f32 0.044715, %v260_v58  ;;  %v253_v3 = vmul.f32 %v237_v59, %v756_v51  ;;  %v261_v7 = vmul.f32 %v245_v60, %v759_v52  ;;  %v477_v9 = vpop.f32.mrb[4].mxu0  ;;  %v485_v10 = vpop.f32.mrb[4].mxu1 }
 0x124   :  { %v286_v11 = vadd.f32 %v270_v61, %v730_v35  ;;  %v294_v12 = vadd.f32 %v278_v62, %v733_v36  ;;  %v271_v13 = vmul.f32 0.044715, %v255_v63  ;;  %v279_v22 = vmul.f32 0.044715, %v263_v0  ;;  %v189_v23 = vpop.f32.mrb[5].mxu0  ;;  %v221_v24 = vpop.f32.mrb[5].mxu1 }
 0x125   :  { %v284_v25 = vadd.f32 %v268_v1, %v736_v39  ;;  %v292_v30 = vadd.f32 %v276_v2, %v739_v40  ;;  %v269_v31 = vmul.f32 0.044715, %v253_v3  ;;  %v277_v33 = vmul.f32 0.044715, %v261_v7  ;;  %v478_v34 = vpop.f32.mrb[6].mxu0  ;;  %v486_v37 = vpop.f32.mrb[6].mxu1 }
 0x126   :  { %v302_v38 = vmul.f32 0.7978846, %v286_v11  ;;  %v310_v41 = vmul.f32 0.7978846, %v294_v12  ;;  %v287_v42 = vadd.f32 %v271_v13, %v746_v45  ;;  %v295_v43 = vadd.f32 %v279_v22, %v749_v46  ;;  %v192_v44 = vpop.f32.mrb[7].mxu0  ;;  %v224_v47 = vpop.f32.mrb[7].mxu1 }
 0x127   :  { %v300_v48 = vmul.f32 0.7978846, %v284_v25  ;;  %v308_v49 = vmul.f32 0.7978846, %v292_v30  ;;  %v285_v50 = vadd.f32 %v269_v31, %v756_v51  ;;  %v293_v53 = vadd.f32 %v277_v33, %v759_v52 }
 0x128   :  { %518 = vtanh.f32 %v302_v38  ;;  %v303_v54 = vmul.f32 0.7978846, %v287_v42  ;;  %v311_v55 = vmul.f32 0.7978846, %v295_v43  ;;  %v786_v56 = vadd.f32 %v477_v9, %v727_v32 }
 0x129   :  { %520 = vtanh.f32 %v310_v41  ;;  %v301_v57 = vmul.f32 0.7978846, %v285_v50  ;;  %v309_v58 = vmul.f32 0.7978846, %v293_v53  ;;  %v789_v59 = vadd.f32 %v485_v10, %v727_v32 }
 0x12a   :  { %522 = vtanh.f32 %v300_v48  ;;  %v242_v60 = vmul.f32 %v786_v56, %v786_v56  ;;  %v794_v61 = vadd.f32 %v727_v32, %v189_v23  ;;  %v797_v62 = vadd.f32 %v727_v32, %v221_v24 }
 0x12b   :  { %524 = vtanh.f32 %v308_v49  ;;  %v250_v63 = vmul.f32 %v789_v59, %v789_v59  ;;  %v802_v0 = vadd.f32 %v478_v34, %v727_v32  ;;  %v805_v1 = vadd.f32 %v486_v37, %v727_v32 }
 0x12c   :  { %526 = vtanh.f32 %v303_v54  ;;  %v258_v2 = vmul.f32 %v242_v60, %v786_v56  ;;  %v240_v3 = vmul.f32 %v794_v61, %v794_v61  ;;  %v248_v7 = vmul.f32 %v797_v62, %v797_v62 }
 0x12d   :  { %528 = vtanh.f32 %v311_v55  ;;  %v266_v9 = vmul.f32 %v250_v63, %v789_v59  ;;  %v243_v10 = vmul.f32 %v802_v0, %v802_v0  ;;  %v251_v11 = vmul.f32 %v805_v1, %v805_v1 }
 0x12e   :  { %530 = vtanh.f32 %v301_v57  ;;  %v274_v12 = vmul.f32 0.044715, %v258_v2  ;;  %v256_v13 = vmul.f32 %v240_v3, %v794_v61  ;;  %v264_v22 = vmul.f32 %v248_v7, %v797_v62 }
 0x12f   :  { %532 = vtanh.f32 %v309_v58  ;;  %v282_v23 = vmul.f32 0.044715, %v266_v9  ;;  %v259_v24 = vmul.f32 %v243_v10, %v802_v0  ;;  %v267_v25 = vmul.f32 %v251_v11, %v805_v1 }
 0x130   :  { %v290_v30 = vadd.f32 %v274_v12, %v786_v56  ;;  %v272_v31 = vmul.f32 0.044715, %v256_v13  ;;  %v280_v33 = vmul.f32 0.044715, %v264_v22  ;;  %v823_v34 = vadd.f32 %v727_v32, %v192_v44 }
 0x131   :  { %v298_v37 = vadd.f32 %v282_v23, %v789_v59  ;;  %v275_v38 = vmul.f32 0.044715, %v259_v24  ;;  %v283_v41 = vmul.f32 0.044715, %v267_v25  ;;  %v827_v42 = vadd.f32 %v727_v32, %v224_v47 }
 0x132   :  { %v519_v43 = vpop.eup %518  ;;  %v306_v48 = vmul.f32 0.7978846, %v290_v30  ;;  %v288_v49 = vadd.f32 %v272_v31, %v794_v61  ;;  %v296_v50 = vadd.f32 %v280_v33, %v797_v62  ;;  %v241_v53 = vmul.f32 %v823_v34, %v823_v34 }
 0x133   :  { %v521_v54 = vpop.eup %520  ;;  %v334_v55 = vadd.f32 1.0, %v519_v43  ;;  %v314_v44 = vmul.f32 0.7978846, %v298_v37  ;;  %v291_v57 = vadd.f32 %v275_v38, %v802_v0  ;;  %v299_v58 = vadd.f32 %v283_v41, %v805_v1 }
 0x134   :  { %v523_v60 = vpop.eup %522  ;;  %v342_v63 = vadd.f32 1.0, %v521_v54  ;;  %534 = vtanh.f32 %v306_v48  ;;  %v304_v32 = vmul.f32 0.7978846, %v288_v49  ;;  %v312_v47 = vmul.f32 0.7978846, %v296_v50 }
 0x135   :  { %v525_v2 = vpop.eup %524  ;;  %v350_v3 = vmul.f32 0.5, %v334_v55  ;;  %v332_v7 = vadd.f32 1.0, %v523_v60  ;;  %536 = vtanh.f32 %v314_v44  ;;  %v307_v9 = vmul.f32 0.7978846, %v291_v57 }
 0x136   :  { %v527_v10 = vpop.eup %526  ;;  %v358_v11 = vmul.f32 0.5, %v342_v63  ;;  %v340_v12 = vadd.f32 1.0, %v525_v2  ;;  %538 = vtanh.f32 %v304_v32  ;;  %v315_v13 = vmul.f32 0.7978846, %v299_v58 }
 0x137   :  { %v529_v22 = vpop.eup %528  ;;  %v366_v23 = vmul.f32 %v350_v3, %v730_v35  ;;  %v348_v24 = vmul.f32 0.5, %v332_v7  ;;  %v335_v25 = vadd.f32 1.0, %v527_v10  ;;  %540 = vtanh.f32 %v312_v47 }
 0x138   :  { %v531_v30 = vpop.eup %530  ;;  %v374_v31 = vmul.f32 %v358_v11, %v733_v36  ;;  %v356_v33 = vmul.f32 0.5, %v340_v12  ;;  %v343_v37 = vadd.f32 1.0, %v529_v22  ;;  %542 = vtanh.f32 %v307_v9 }
 0x139   :  { %v533_v38 = vpop.eup %532  ;;  %v382_v41 = vadd.f32 %v366_v23, %v688_v14  ;;  %v364_v43 = vmul.f32 %v348_v24, %v736_v39  ;;  %v351_v48 = vmul.f32 0.5, %v335_v25  ;;  %v333_v49 = vadd.f32 1.0, %v531_v30 }
 0x13a   :  { %v390_v50 = vadd.f32 %v374_v31, %v692_v16  ;;  %v372_v35 = vmul.f32 %v356_v33, %v739_v40  ;;  %v359_v54 = vmul.f32 0.5, %v343_v37  ;;  %v341_v55 = vadd.f32 1.0, %v533_v38 }
 0x13b   :  { %398 = vst [vmem:[#allocation7 + $0x10] sm:$0xff] %v382_v41  ;;  %v380_v44 = vadd.f32 %v364_v43, %v676_v4  ;;  %v367_v36 = vmul.f32 %v351_v48, %v746_v45  ;;  %v349_v57 = vmul.f32 0.5, %v333_v49  ;;  %544 = vtanh.f32 %v315_v13 }
 0x13c   :  { %406 = vst [vmem:[#allocation7 + $0x50] sm:$0xff] %v390_v50  ;;  %v388_v14 = vadd.f32 %v372_v35, %v680_v6  ;;  %v375_v39 = vmul.f32 %v359_v54, %v749_v46  ;;  %v357_v58 = vmul.f32 0.5, %v341_v55  ;;  %v257_v60 = vmul.f32 %v241_v53, %v823_v34 }
 0x13d   :  { %396 = vst [vmem:[#allocation7] sm:$0xff] %v380_v44  ;;  %v383_v16 = vadd.f32 %v367_v36, %v690_v15  ;;  %v365_v40 = vmul.f32 %v349_v57, %v756_v51  ;;  %v249_v4 = vmul.f32 %v827_v42, %v827_v42 }
 0x13e   :  { %v535_v63 = vpop.eup %534  ;;  %404 = vst [vmem:[#allocation7 + $0x40] sm:$0xff] %v388_v14  ;;  %v391_v45 = vadd.f32 %v375_v39, %v694_v17  ;;  %v373_v32 = vmul.f32 %v357_v58, %v759_v52  ;;  %v273_v6 = vmul.f32 0.044715, %v257_v60 }
 0x13f   :  { %v537_v47 = vpop.eup %536  ;;  %399 = vst [vmem:[#allocation7 + $0x18] sm:$0xff] %v383_v16  ;;  %v381_v46 = vadd.f32 %v365_v40, %v678_v5  ;;  %v338_v53 = vadd.f32 1.0, %v535_v63  ;;  %v265_v2 = vmul.f32 %v249_v4, %v827_v42 }
 0x140   :  { %v539_v15 = vpop.eup %538  ;;  %407 = vst [vmem:[#allocation7 + $0x58] sm:$0xff] %v391_v45  ;;  %v389_v51 = vadd.f32 %v373_v32, %v684_v8  ;;  %v346_v3 = vadd.f32 1.0, %v537_v47  ;;  %v289_v7 = vadd.f32 %v273_v6, %v823_v34 }
 0x141   :  { %v541_v9 = vpop.eup %540  ;;  %397 = vst [vmem:[#allocation7 + $0x8] sm:$0xff] %v381_v46  ;;  %v354_v17 = vmul.f32 0.5, %v338_v53  ;;  %v336_v10 = vadd.f32 1.0, %v539_v15  ;;  %v281_v52 = vmul.f32 0.044715, %v265_v2 }
 0x142   :  { %v543_v11 = vpop.eup %542  ;;  %405 = vst [vmem:[#allocation7 + $0x48] sm:$0xff] %v389_v51  ;;  %v362_v12 = vmul.f32 0.5, %v346_v3  ;;  %v344_v13 = vadd.f32 1.0, %v541_v9  ;;  %v305_v5 = vmul.f32 0.7978846, %v289_v7 }
 0x143   :  { %v370_v22 = vmul.f32 %v354_v17, %v786_v56  ;;  %v352_v23 = vmul.f32 0.5, %v336_v10  ;;  %v339_v24 = vadd.f32 1.0, %v543_v11  ;;  %v297_v25 = vadd.f32 %v281_v52, %v827_v42 }
 0x144   :  { %v378_v8 = vmul.f32 %v362_v12, %v789_v59  ;;  %v360_v30 = vmul.f32 0.5, %v344_v13  ;;  %546 = vtanh.f32 %v305_v5 }
 0x145   :  { %v545_v31 = vpop.eup %544  ;;  %v386_v33 = vadd.f32 %v370_v22, %v712_v26  ;;  %v368_v37 = vmul.f32 %v352_v23, %v794_v61  ;;  %v355_v38 = vmul.f32 0.5, %v339_v24  ;;  %v313_v41 = vmul.f32 0.7978846, %v297_v25 }
 0x146   :  { %v394_v43 = vadd.f32 %v378_v8, %v716_v28  ;;  %v376_v48 = vmul.f32 %v360_v30, %v797_v62  ;;  %v347_v56 = vadd.f32 1.0, %v545_v31 }
 0x147   :  { %402 = vst [vmem:[#allocation7 + $0x30] sm:$0xff] %v386_v33  ;;  %v384_v49 = vadd.f32 %v368_v37, %v696_v18  ;;  %v371_v50 = vmul.f32 %v355_v38, %v802_v0  ;;  %548 = vtanh.f32 %v313_v41 }
 0x148   :  { %410 = vst [vmem:[#allocation7 + $0x70] sm:$0xff] %v394_v43  ;;  %v392_v59 = vadd.f32 %v376_v48, %v700_v20  ;;  %v363_v35 = vmul.f32 0.5, %v347_v56 }
 0x149   :  { %400 = vst [vmem:[#allocation7 + $0x20] sm:$0xff] %v384_v49  ;;  %v387_v26 = vadd.f32 %v371_v50, %v714_v27 }
 0x14a   :  { %408 = vst [vmem:[#allocation7 + $0x60] sm:$0xff] %v392_v59  ;;  %v379_v61 = vmul.f32 %v363_v35, %v805_v1 }
 0x14b   :  { %403 = vst [vmem:[#allocation7 + $0x38] sm:$0xff] %v387_v26 }
 0x14c   :  { %v395_v28 = vadd.f32 %v379_v61, %v718_v29 }
 0x14e   :  { %v547_v62 = vpop.eup %546  ;;  %411 = vst [vmem:[#allocation7 + $0x78] sm:$0xff] %v395_v28 }
 0x14f   :  { %v337_v54 = vadd.f32 1.0, %v547_v62 }
 0x151   :  { %v549_v18 = vpop.eup %548  ;;  %v353_v55 = vmul.f32 0.5, %v337_v54 }
 0x152   :  { %v345_v0 = vadd.f32 1.0, %v549_v18 }
 0x153   :  { %v369_v44 = vmul.f32 %v353_v55, %v823_v34 }
 0x154   :  { %v361_v36 = vmul.f32 0.5, %v345_v0 }
 0x155   :  { %v385_v20 = vadd.f32 %v369_v44, %v698_v19 }
 0x156   :  { %v377_v27 = vmul.f32 %v361_v36, %v827_v42 }
 0x157   :  { %401 = vst [vmem:[#allocation7 + $0x28] sm:$0xff] %v385_v20 }
 0x158   :  { %v393_v1 = vadd.f32 %v377_v27, %v702_v21 }
 0x15a   :  { %409 = vst [vmem:[#allocation7 + $0x68] sm:$0xff] %v393_v1 }
 0x15b   :  { %605 = shalt.err (!%p602_p6)
}
 0x15c   :  { %s606_s17 = scalar_lea.hbm %s891_s3, 2048 }
 0x15d   :  { %p607_p7 = scmp.ne.s32.totalorder %s891_s3, %s606_s17  ;;  %p610_p8 = scmp.lt.u32.totalorder %s606_s17, %s891_s3 }
 0x15f   :  { %p612_p9 = pnand %p610_p8, %p607_p7 }
 0x161   :  { %615 = shalt.err (!%p612_p9)
}
 0x162   :  { %423 = dma.vmem_to_hbm [thread:$0]  %s418_s13, 2048, %s891_s3, [#allocation4], %s623_s22, %s623_s22, %s624_s23  }
 0x163   :  { %620 = dma.done.wait [#allocation4], 2048  }
 0x164   :  { %621 = vsyncadd [#allocation4], 4294965248 }
 0x165   :  { %427 = vsyncpa [#allocation3], 1 }
 0x166   :  { %428 = vsyncpa [#allocation6], 1 }
 0x167   :  { %429 = vsyncpa [#allocation4], 1 }

</bundles_post_ra>
